<compile_context>
chip_gen: v7x
topology: tpu7x:2x2x1
jax: 0.10.0
libtpu: 0.0.40
codegen_flags: <defaults>
</compile_context>

<pallas_src>
import jax
import jax.numpy as jnp
from jax.experimental import pallas as pl
from jax.experimental.pallas import tpu as pltpu


def _round_up(v, m):
    return -(-v // m) * m


def _attention_kernel(x_ref, w_ref, b_ref, out_ref, wt_ref):
    # x_ref:   (bt, S, F)  VMEM tile of the input, native dtype
    # w_ref:   (1, F)      VMEM lane-dense weight row (f32)
    # b_ref:   (1,)        SMEM scalar bias (f32)
    # out_ref: (bt, S, F)  weighted input tile (native dtype)
    # wt_ref:  (bt, S, 1)  attention weights tile (native dtype)
    x = x_ref[...]                                   # keep native dtype (bf16 VALU on v6e/v7x)
    w = w_ref[...].astype(x.dtype)                   # (1, F), broadcasts over (bt, S)
    b = b_ref[0]                                     # f32 scalar from SMEM

    # logits[b, s] = <x[b, s, :], w> + bias.
    # Elementwise multiply stays in the input dtype; only the lane-axis (F)
    # reduction accumulates in f32.  keepdims keeps S on the sublane axis, so
    # no lane<->sublane relayout is needed before the big multiply below.
    xw = x * w                                       # (bt, S, F)  VPU
    logits = jnp.sum(xw.astype(jnp.float32), axis=-1, keepdims=True) + b   # (bt, S, 1)

    # Numerically-stable softmax over the sequence (sublane) axis, all f32.
    m = jnp.max(logits, axis=1, keepdims=True)       # (bt, 1, 1)
    e = jnp.exp(logits - m)                          # (bt, S, 1)  EUP
    denom = jnp.sum(e, axis=1, keepdims=True)        # (bt, 1, 1)
    inv = pl.reciprocal(denom, approx=True)          # EUP vrcp
    inv = inv * (2.0 - denom * inv)                  # one Newton step -> ~full f32 precision
    wts = e * inv                                    # (bt, S, 1)

    # Dominant multiply in the input dtype; (bt,S,1) -> (bt,S,F) is a free
    # lane-broadcast because S already sits on sublanes.
    out_ref[...] = (x * wts.astype(x.dtype)).astype(out_ref.dtype)
    wt_ref[...] = wts.astype(wt_ref.dtype)


def _pick_tiling(B, S, F, itemsize, *, num_cores=2, x_tile_budget_bytes=2 << 20):
    """Pick (bt, nb): batch rows per tile and number of grid steps.

    The budget is in *physical* VMEM bytes -- the last dim pads to 128 lanes
    and the second-to-last to 8 sublanes -- so the ~2 MiB per-tile knee is
    honoured even when F % 128 != 0.  Additionally require >= 2 grid steps per
    TensorCore (num_cores=2 on v7x) whenever B permits, so each core keeps its
    input DMA double-buffered rather than serialising DMA-in/compute/DMA-out.
    """
    row_vmem = _round_up(S, 8) * _round_up(F, 128) * itemsize
    bt = max(1, x_tile_budget_bytes // row_vmem)
    target_steps = min(B, 2 * num_cores)
    if target_steps > 1:
        bt = min(bt, max(1, B // target_steps))
    bt = max(1, min(bt, B))
    nb = -(-B // bt)
    return bt, nb


def attention_forward(x, weight, bias, *, num_cores=2):
    """x: (B, S, F); weight: (1, F) torch Linear weight; bias: (1,).

    Returns (weighted_input (B, S, F), weights (B, S, 1)).  Weights are in
    x.dtype (softmax itself runs in f32), matching PyTorch-under-low-precision.
    """
    B, S, F = x.shape
    itemsize = jnp.dtype(x.dtype).itemsize
    bt, nb = _pick_tiling(B, S, F, itemsize, num_cores=num_cores)
    B_pad = bt * nb

    # Non-divisor batch sizes: pad B up to bt*nb (padded rows produce a finite
    # uniform softmax and are sliced off below).
    x_in = x if B_pad == B else jnp.pad(x, ((0, B_pad - B), (0, 0), (0, 0)))

    w_row = weight.reshape(1, F).astype(jnp.float32)     # lane-dense weight row
    b_vec = bias.reshape(1).astype(jnp.float32)          # SMEM scalar

    # Honest VMEM accounting at (8,128)-padded physical sizes:
    #   x tile (double-buffered) + weighted-input tile (double-buffered)
    #   + weights tile (double-buffered) + in-kernel f32 temporaries.
    lanes_f = _round_up(F, 128)
    subl_s = _round_up(S, 8)
    x_tile_vmem = bt * subl_s * lanes_f * itemsize
    f32_tile_vmem = bt * subl_s * lanes_f * 4
    wt_tile_vmem = bt * subl_s * 128 * itemsize
    vmem_est = (2 * x_tile_vmem            # x, double-buffered
                + 2 * x_tile_vmem          # weighted-input out, double-buffered
                + 2 * wt_tile_vmem         # weights out, double-buffered
                + 2 * f32_tile_vmem        # f32 temps (xw product + f32 cast)
                + lanes_f * 4 + (64 << 10))
    vmem_limit = int(min(max(2 * vmem_est, 16 << 20), 32 << 20))

    grid_spec = pltpu.PrefetchScalarGridSpec(
        num_scalar_prefetch=0,
        grid=(nb,),
        in_specs=[
            pl.BlockSpec((bt, S, F), lambda i: (i, 0, 0)),         # x tile
            pl.BlockSpec((1, F), lambda i: (0, 0)),                # weight row
            pl.BlockSpec(memory_space=pltpu.MemorySpace.SMEM),     # bias scalar
        ],
        out_specs=[
            pl.BlockSpec((bt, S, F), lambda i: (i, 0, 0)),         # weighted input
            pl.BlockSpec((bt, S, 1), lambda i: (i, 0, 0)),         # weights (B,S,1)
        ],
    )

    out_shapes = (
        jax.ShapeDtypeStruct((B_pad, S, F), x.dtype),
        jax.ShapeDtypeStruct((B_pad, S, 1), x.dtype),
    )

    weighted, weights = pl.pallas_call(
        _attention_kernel,
        out_shape=out_shapes,
        grid_spec=grid_spec,
        compiler_params=pltpu.CompilerParams(
            dimension_semantics=("parallel",),
            vmem_limit_bytes=vmem_limit),
    )(x_in, w_row, b_vec)

    if B_pad != B:
        weighted = weighted[:B]
        weights = weights[:B]
    return weighted, weights


def _reference(x, weight, bias):
    logits = jnp.einsum("bsf,of->bso", x.astype(jnp.float32),
                        weight.astype(jnp.float32)) + bias.astype(jnp.float32)
    wts = jax.nn.softmax(logits, axis=1)
    return x.astype(jnp.float32) * wts, wts


def _check(B, S, F, dtype, key, atol, rtol):
    k_x, k_w, k_b = jax.random.split(key, 3)
    x = jax.random.normal(k_x, (B, S, F), dtype=jnp.float32).astype(dtype)
    bound = 1.0 / jnp.sqrt(F)
    weight = jax.random.uniform(k_w, (1, F), minval=-bound, maxval=bound,
                                dtype=jnp.float32)
    bias = jax.random.uniform(k_b, (1,), minval=-bound, maxval=bound,
                              dtype=jnp.float32)

    weighted, wts = attention_forward(x, weight, bias)
    jax.block_until_ready(weighted)
    jax.block_until_ready(wts)

    ref_out, ref_wts = _reference(x, weight, bias)
    assert weighted.shape == (B, S, F) and wts.shape == (B, S, 1)
    assert jnp.allclose(weighted.astype(jnp.float32), ref_out, atol=atol, rtol=rtol)
    assert jnp.allclose(wts.astype(jnp.float32), ref_wts, atol=atol, rtol=rtol)


if __name__ == "__main__":
    key = jax.random.PRNGKey(0)
    k0, k1, k2 = jax.random.split(key, 3)

    # primary shape: batch=2, seq=8, in_features=32, f32, strict tolerance
    _check(2, 8, 32, jnp.float32, k0, atol=1e-5, rtol=1e-5)
    # non-divisor batch (pads 11 -> 12), f32, strict tolerance
    _check(11, 8, 32, jnp.float32, k1, atol=1e-5, rtol=1e-5)
    # bf16 path: logits/softmax in f32, dominant multiplies stay in bf16
    _check(4, 8, 32, jnp.bfloat16, k2, atol=5e-2, rtol=5e-2)

    print("KERNEL_OK")
</pallas_src>

<mosaic_0001>
module attributes {stable_mosaic.version = 11 : i64} {
  func.func @_attention_kernel(%arg0: i32, %arg1: memref<1x8x32xf32, #tpu.memory_space<vmem>>, %arg2: memref<1x32xf32, #tpu.memory_space<vmem>>, %arg3: memref<1xf32, #tpu.memory_space<smem>>, %arg4: memref<1x8x32xf32, #tpu.memory_space<vmem>>, %arg5: memref<1x8x1xf32, #tpu.memory_space<vmem>>) attributes {dimension_semantics = [#tpu.dimension_semantics<parallel>], iteration_bounds = array<i64: 2>, scalar_prefetch = 0 : i64, scratch_operands = 0 : i64, tpu.core_type = #tpu.core_type<tc>, window_params = [{transform_indices = @transform_0, window_bounds = array<i64: 1, 8, 32>}, {pipeline_mode = #tpu.pipeline_mode<synchronous>, transform_indices = @transform_1, window_bounds = array<i64: 1, 32>}, {transform_indices = @transform_2, window_bounds = array<i64: 1>}, {transform_indices = @transform_3, window_bounds = array<i64: 1, 8, 32>}, {transform_indices = @transform_4, window_bounds = array<i64: 1, 8, 1>}]} {
    %c0 = arith.constant 0 : index
    %c0_0 = arith.constant 0 : index
    %c0_1 = arith.constant 0 : index
    %0 = vector.load %arg1[%c0, %c0_0, %c0_1] : memref<1x8x32xf32, #tpu.memory_space<vmem>>, vector<1x8x32xf32>
    %c0_2 = arith.constant 0 : index
    %c0_3 = arith.constant 0 : index
    %1 = vector.load %arg2[%c0_2, %c0_3] : memref<1x32xf32, #tpu.memory_space<vmem>>, vector<1x32xf32>
    %c0_4 = arith.constant 0 : index
    %2 = memref.load %arg3[%c0_4] : memref<1xf32, #tpu.memory_space<smem>>
    %3 = vector.shape_cast %1 : vector<1x32xf32> to vector<1x1x32xf32>
    %4 = vector.broadcast %3 : vector<1x1x32xf32> to vector<1x8x32xf32>
    %5 = arith.mulf %0, %4 : vector<1x8x32xf32>
    %cst = arith.constant dense<0.000000e+00> : vector<1x8xf32>
    %6 = vector.multi_reduction <add>, %5, %cst [2] : vector<1x8x32xf32> to vector<1x8xf32>
    %7 = vector.shape_cast %6 : vector<1x8xf32> to vector<1x8x1xf32>
    %8 = vector.broadcast %2 : f32 to vector<1x8x1xf32>
    %9 = arith.addf %7, %8 : vector<1x8x1xf32>
    %cst_5 = arith.constant dense<0xFF800000> : vector<1x1xf32>
    %10 = vector.multi_reduction <maximumf>, %9, %cst_5 [1] : vector<1x8x1xf32> to vector<1x1xf32>
    %11 = vector.shape_cast %10 : vector<1x1xf32> to vector<1x1x1xf32>
    %12 = vector.broadcast %11 : vector<1x1x1xf32> to vector<1x8x1xf32>
    %13 = arith.subf %9, %12 : vector<1x8x1xf32>
    %14 = math.exp %13 : vector<1x8x1xf32>
    %cst_6 = arith.constant dense<0.000000e+00> : vector<1x1xf32>
    %15 = vector.multi_reduction <add>, %14, %cst_6 [1] : vector<1x8x1xf32> to vector<1x1xf32>
    %16 = vector.shape_cast %15 : vector<1x1xf32> to vector<1x1x1xf32>
    %17 = tpu.reciprocal %16 {approx = true} : vector<1x1x1xf32> -> vector<1x1x1xf32>
    %18 = arith.mulf %16, %17 : vector<1x1x1xf32>
    %cst_7 = arith.constant 2.000000e+00 : f32
    %19 = vector.broadcast %cst_7 : f32 to vector<1x1x1xf32>
    %20 = arith.subf %19, %18 : vector<1x1x1xf32>
    %21 = arith.mulf %17, %20 : vector<1x1x1xf32>
    %22 = vector.broadcast %21 : vector<1x1x1xf32> to vector<1x8x1xf32>
    %23 = arith.mulf %14, %22 : vector<1x8x1xf32>
    %24 = vector.broadcast %23 : vector<1x8x1xf32> to vector<1x8x32xf32>
    %25 = arith.mulf %0, %24 : vector<1x8x32xf32>
    %c0_8 = arith.constant 0 : index
    %c0_9 = arith.constant 0 : index
    %c0_10 = arith.constant 0 : index
    %26 = vector.load %arg4[%c0_8, %c0_9, %c0_10] : memref<1x8x32xf32, #tpu.memory_space<vmem>>, vector<1x8x32xf32>
    tpu.vector_store %arg4[%c0_8, %c0_9, %c0_10], %25 {strides = array<i32>} : memref<1x8x32xf32, #tpu.memory_space<vmem>>, vector<1x8x32xf32>,
    %c0_11 = arith.constant 0 : index
    %c0_12 = arith.constant 0 : index
    %c0_13 = arith.constant 0 : index
    %27 = vector.load %arg5[%c0_11, %c0_12, %c0_13] : memref<1x8x1xf32, #tpu.memory_space<vmem>>, vector<1x8x1xf32>
    tpu.vector_store %arg5[%c0_11, %c0_12, %c0_13], %23 {strides = array<i32>} : memref<1x8x1xf32, #tpu.memory_space<vmem>>, vector<1x8x1xf32>,
    return
  }
  func.func @transform_0(%arg0: i32) -> (i32, i32, i32) {
    %c0_i32 = arith.constant 0 : i32
    %c0_i32_0 = arith.constant 0 : i32
    %c0_i32_1 = arith.constant 0 : i32
    return %arg0, %c0_i32, %c0_i32_0 : i32, i32, i32
  }
  func.func @transform_1(%arg0: i32) -> (i32, i32) {
    %c0_i32 = arith.constant 0 : i32
    %c0_i32_0 = arith.constant 0 : i32
    %c0_i32_1 = arith.constant 0 : i32
    return %c0_i32, %c0_i32_0 : i32, i32
  }
  func.func @transform_2(%arg0: i32) -> i32 {
    %c0_i32 = arith.constant 0 : i32
    %c0_i32_0 = arith.constant 0 : i32
    return %c0_i32 : i32
  }
  func.func @transform_3(%arg0: i32) -> (i32, i32, i32) {
    %c0_i32 = arith.constant 0 : i32
    %c0_i32_0 = arith.constant 0 : i32
    %c0_i32_1 = arith.constant 0 : i32
    return %arg0, %c0_i32, %c0_i32_0 : i32, i32, i32
  }
  func.func @transform_4(%arg0: i32) -> (i32, i32, i32) {
    %c0_i32 = arith.constant 0 : i32
    %c0_i32_0 = arith.constant 0 : i32
    %c0_i32_1 = arith.constant 0 : i32
    return %arg0, %c0_i32, %c0_i32_0 : i32, i32, i32
  }
}

</mosaic_0001>

<bundles_post_ra>
// kernel: tpu_custom_call.1
= control target key start
LH: loop header
LB: loop body
LE: loop exit
PB: predicated region body
PF: predicated region fallthrough
CT: control target
= control target key end

     0   :  { %s747_s0 = inlined_call_operand.hbm [shape: f32[2,8,32], index: 0, kind: input, shape index: {}]   ;;  %s748_s1 = inlined_call_operand.vmem [shape: f32[1,32], index: 1, kind: input, shape index: {}]   ;;  %s749_s2 = inlined_call_operand.<no memory space> [shape: f32[1], index: 2, kind: input, shape index: {}]   ;;  %s750_s3 = inlined_call_operand.hbm [shape: f32[2,8,32], index: 3, kind: output, shape index: {0}]   ;;  %s751_s4 = inlined_call_operand.vmem [shape: f32[2,8,1], index: 4, kind: output, shape index: {1}]  }
   0x1   :  { %10 = sst [smem:[#allocation2]] %s749_s2 }
   0x2   :  { %11 = vsyncpa [#allocation4], 0 }
   0x3   :  { %13 = vsyncpa [#allocation4 + $0x1], 0 }
   0x4   :  { %14 = vsyncpa [#allocation5], 0 }
   0x5   :  { %16 = vsyncpa [#allocation5 + $0x1], 0  ;;  %s572_s17 = smov 0   ;;  %s574_s18 = smov 0  }
   0x6   :  { %s576_s19 = smov 0   ;;  %s578_s20 = smov 0  }
   0x7 LB: > { %s593_s2 = sadd.s32 4294967295, %s540_s20   ;;  %s380_s21 = sadd.s32 4294967294, %s540_s20   ;;  %s540_s20 = sphi %s578_s20, %s766_s20   ;;  %s536_s19 = sphi %s576_s19, %s765_s19   ;;  %s532_s18 = sphi %s574_s18, %s764_s18   ;;  %s528_s17 = sphi %s572_s17, %s763_s17  }
   0x8   : > { %s597_s22 = sadd.s32 1, %s540_s20   ;;  %s29_s23 = sadd.s32 1, %s536_s19 }
   0x9   : > { %s26_s24 = ssub.s32 %s540_s20, %s597_s22  ;;  %p36_p0 = scmp.ne.s32.totalorder %s536_s19, %s532_s18 }
   0xa   : > { %p27_p1 = scmp.eq.s32.totalorder %s26_s24, 0  ;;  %p37_p2 = scmp.eq.s32.totalorder %s540_s20, 0 }
   0xb   : > { %p42_p3 = scmp.ne.s32.totalorder %s532_s18, %s528_s17  ;;  %p43_p4 = scmp.eq.s32.totalorder %s593_s2, 0 }
   0xc   : > { %s609_s25 = scalar_select %p27_p1, %s536_s19, %s29_s23  }
   0xd   : > { %p611_p5 = por %p37_p2, %p36_p0  ;;  %p615_p6 = por %p43_p4, %p42_p3 }
   0xe   : > { %p108_p7 = scmp.eq.s32.totalorder %s593_s2, 1  ;;  %p114_p8 = scmp.eq.s32.totalorder %s380_s21, 1 }
   0xf   : > { %p406_p10 = scmp.lt.s32.totalorder %s540_s20, 2  ;;  %s166_s30 = sand.u32 1, %s536_s19  }
  0x10   : > { %p622_p11 = por %p108_p7, %p36_p0  ;;  %p626_p12 = por %p114_p8, %p42_p3 }
  0x11   : > { %s384_s5 = sshll.u32 %s540_s20, 7  ;;  %s383_s6 = sshll.u32 %s166_s30, 3 }
  0x12   : > { %s755_s28 = scalar_select %p622_p11, 1, 0 }
  0x13   : > { %s756_s29 = scalar_select %p626_p12, 1, 0 }
  0x14   : > { %s635_s9 = scalar_lea.hbm %s747_s0, %s384_s5  ;;  %s170_s10 = scalar_lea.vmem [#allocation3], %s383_s6 }
  0x15   : > { %s177_s11 = sshll.u32 %s170_s10, 4  ;;  %p639_p13 = pnand %p406_p10, %p611_p5  ;;  %s643_s11 = int_to_ptr.vmem [resolvable:$true] %s177_s11 }
  0x16   : > { %s167_s13 = scalar_lea.sflag [#allocation4], %s166_s30  ;;  %s444_s14 = scalar_lea.hbm %s635_s9, 128 }
  0x17   : > { %p445_p2 = scmp.ne.s32.totalorder %s635_s9, %s444_s14  ;;  %p446_p3 = pneg %p639_p13 }
  0x18   : > { %s449_s21 = scalar_lea.hbm %s747_s0, 256  ;;  %p450_p5 = scmp.lt.u32.totalorder %s635_s9, %s747_s0 }
  0x19   : > { %p447_p4 = pnand %p446_p3, %p445_p2  ;;  %p451_p8 = scmp.lt.u32.totalorder %s449_s21, %s444_s14 }
  0x1a   : > { %p453_p9 = scmp.lt.u32.totalorder %s444_s14, %s635_s9 }
  0x1b   : > { %p448_p7 = pneg %p447_p4  ;;  %p452_p10 = por %p451_p8, %p450_p5 }
  0x1d   : > { %p454_p0 = por %p453_p9, %p452_p10 }
  0x1f   : > { %p455_p1 = pnand %p454_p0, %p448_p7 }
  0x21   : > { %458 = shalt.err (!%p455_p1)
}
  0x22   : > { %s459_s26 = scalar_lea.vmem %s643_s11, 128  ;;  %s542_s30 = smov [#allocation3]  }
  0x23   : > { %p460_p2 = scmp.ne.s32.totalorder %s643_s11, %s459_s26  ;;  %s464_s5 = sshll.u32 %s542_s30, 4  ;;  %s465_s5 = int_to_ptr.vmem [resolvable:$false] %s464_s5 }
  0x24   : > { %s466_s6 = scalar_lea.vmem %s465_s5, 256  ;;  %p467_p11 = scmp.lt.s32.totalorder %s643_s11, %s465_s5 }
  0x25   : > { %p462_p4 = pnand %p460_p2, %p446_p3  ;;  %p468_p5 = scmp.lt.s32.totalorder %s466_s6, %s459_s26 }
  0x27   : > { %p463_p12 = pneg %p462_p4  ;;  %p469_p8 = por %p468_p5, %p467_p11 }
  0x29   : > { %p470_p9 = pnand %p469_p8, %p463_p12 }
  0x2b   : > { %473 = shalt.err (!%p470_p9)
}
  0x2c   : > { %401 = dma.hbm_to_vmem [thread:$0]  (!%p639_p13), %s635_s9, 128, %s643_s11, %s167_s13  }
  0x2d   : > { %p758_p0 = scmp.lt.s32.totalorder %s540_s20, 3  ;;  %p759_p1 = scmp.ge.s32.totalorder %s540_s20, 1 }
  0x2f   : > { %p183_p3 = pnand %p759_p1, %p758_p0 }
  0x30   : > { %s677_s7 = sand.u32 (!%p183_p3), 1, %s532_s18  }
  0x31   : > { %186 = sbr.rel (%p183_p3) target bundleno = 280 (0x118), region = 32  ;;  %s386_s8 = sshll.u32 (!%p183_p3), %s677_s7, 3 }
  0x32   : > { %s189_s10 = scalar_lea.sflag (!%p183_p3), [#allocation4], %s677_s7  ;;  %s192_s12 = scalar_lea.vmem (!%p183_p3), [#allocation3], %s386_s8 }
  0x38   : > { %519 = dma.done.wait (%p615_p6), %s189_s10, 128  }
  0x39   : > { %521 = vsyncadd (%p615_p6), %s189_s10, 4294967168  ;;  %v225_v0 = vld [vmem:[%s192_s12] sm:$0xff]  ;;  %vm235_vm0 = vcmask 261120   ;;  %s227_s13 = sld [smem:[#allocation2]]  ;;  %p221_p6 = scmp.lt.s32.totalorder %s593_s2, 1  ;;  %vm263_vm1 = vcmask 7168  }
  0x3a   : > { %v389_v1 = vld [vmem:[%s748_s1] ss:$0 sm:$0xff]  ;;  %s391_s23 = sshll.u32 %s593_s2, 7  ;;  %s214_s24 = scalar_lea.vmem [#allocation6], %s386_s8 }
  0x3b   : > { %v234_v2 = vmul.f32 %v389_v1, %v225_v0  ;;  %s222_s27 = scalar_select %p221_p6, %s593_s2, 1 }
  0x3c   : > { %s283_s26 = sshll.u32 %s214_s24, 4  ;;  %s702_s6 = scalar_lea.hbm %s750_s3, %s391_s23  ;;  %s704_s26 = int_to_ptr.vmem [resolvable:$true] %s283_s26 }
  0x3d   : > { %v236_v3 = vsel %vm235_vm0, %v234_v2, 0.0  ;;  %s388_s14 = sshll.u32 %s222_s27, 3  ;;  %s266_s10 = scalar_lea.sflag [#allocation5], %s677_s7 }
  0x3e   : > { %237 = vadd.xlane.f32.xlu0 %v236_v3  ;;  %s224_s21 = scalar_lea.vmem %s751_s4, %s388_s14  ;;  %s474_s2 = scalar_lea.vmem %s704_s26, 128 }
  0x3f   : > { %v239_v4 = vstv %s227_s13  ;;  %p475_p11 = scmp.ne.s32.totalorder %s704_s26, %s474_s2  ;;  %p760_p12 = scmp.ne.s32.totalorder %s755_s28, 0 }
  0x40   : > { %s543_s8 = smov [#allocation6]  }
  0x41   : > { %p476_p13 = pnand %p475_p11, %p760_p12  ;;  %s478_s12 = sshll.u32 %s543_s8, 4  ;;  %s479_s12 = int_to_ptr.vmem [resolvable:$false] %s478_s12 }
  0x42   : > { %s480_s9 = scalar_lea.vmem %s479_s12, 256  ;;  %p481_p10 = scmp.lt.s32.totalorder %s704_s26, %s479_s12 }
  0x43   : > { %p477_p7 = pneg %p476_p13  ;;  %p482_p2 = scmp.lt.s32.totalorder %s480_s9, %s474_s2 }
  0x45   : > { %p483_p4 = por %p482_p2, %p481_p10 }
  0x47   : > { %p484_p5 = pnand %p483_p4, %p477_p7 }
  0xcb   : > { %v238_v5 = vpop.xlane.xlu0 %237 }
  0xcc   : > { %v240_v6 = vadd.f32 %v239_v4, %v238_v5 }
  0xce   : > { %v241_v7 = vrot.slane %v240_v6, 4 }
  0xd0   : > { %v242_v8 = vmax.f32 %v240_v6, %v241_v7 }
  0xd2   : > { %v243_v9 = vrot.slane %v242_v8, 2 }
  0xd4   : > { %v244_v10 = vmax.f32 %v242_v8, %v243_v9 }
  0xd6   : > { %v245_v11 = vrot.slane %v244_v10, 1 }
  0xd8   : > { %v246_v12 = vmax.f32 %v244_v10, %v245_v11 }
  0xda   : > { %v247_v13 = vsub.f32 %v240_v6, %v246_v12 }
  0xdc   : > { %v248_v14 = vmul.f32 1.442695, %v247_v13 }
  0xde   : > { %440 = vpow2.f32 %v248_v14 }
  0xe8   : > { %v441_v15 = vpop.eup %440 }
  0xe9   : > { %v250_v16 = vrot.slane %v441_v15, 4 }
  0xeb   : > { %v251_v17 = vadd.f32 %v441_v15, %v250_v16 }
  0xed   : > { %v252_v18 = vrot.slane %v251_v17, 2 }
  0xef   : > { %v253_v19 = vadd.f32 %v252_v18, %v251_v17 }
  0xf1   : > { %v254_v20 = vrot.slane %v253_v19, 1 }
  0xf3   : > { %v255_v21 = vadd.f32 %v254_v20, %v253_v19 }
  0xf5   : > { %442 = vrcp.f32 %v255_v21 }
  0xff   : > { %v443_v22 = vpop.eup %442 }
 0x100   : > { %v257_v23 = vmul.f32 %v443_v22, %v255_v21 }
 0x102   : > { %v258_v24 = vsub.f32 2.0, %v257_v23 }
 0x104   : > { %v259_v25 = vmul.f32 %v443_v22, %v258_v24 }
 0x106   : > { %v260_v26 = vmul.f32 %v441_v15, %v259_v25 }
 0x108   : > { %v261_v27 = vmul.f32 %v260_v26, %v225_v0  ;;  %264 = vst.msk [vmem:[%s224_s21] sm:$0xff] %vm263_vm1, %v260_v26 }
 0x10a   : > { %262 = vst.msk [vmem:[%s214_s24] sm:$0xff] %vm235_vm0, %v261_v27 }
 0x10b   : > { %487 = shalt.err (!%p484_p5)
}
 0x10c   : > { %s488_s7 = scalar_lea.hbm %s702_s6, 128  ;;  %s492_s27 = scalar_lea.hbm %s750_s3, 256 }
 0x10d   : > { %p489_p8 = scmp.ne.s32.totalorder %s702_s6, %s488_s7  ;;  %p493_p1 = scmp.lt.u32.totalorder %s702_s6, %s750_s3 }
 0x10e   : > { %p494_p3 = scmp.lt.u32.totalorder %s492_s27, %s488_s7  ;;  %p496_p11 = scmp.lt.u32.totalorder %s488_s7, %s702_s6 }
 0x10f   : > { %p490_p9 = pnand %p489_p8, %p760_p12 }
 0x110   : > { %p495_p6 = por %p494_p3, %p493_p1 }
 0x111   : > { %p491_p0 = pneg %p490_p9 }
 0x112   : > { %p497_p13 = por %p496_p11, %p495_p6 }
 0x114   : > { %p498_p7 = pnand %p497_p13, %p491_p0 }
 0x116   : > { %501 = shalt.err (!%p498_p7)
}
 0x117   : > { %396 = dma.vmem_to_hbm [thread:$0]  (%p760_p12), %s704_s26, 128, %s702_s6, %s266_s10  }
 0x118 PF: > { %s298_s16 = sand.u32 1, %s528_s17   ;;  %p761_p10 = scmp.ne.s32.totalorder %s756_s29, 0 }
 0x119   : > { %p762_p2 = scmp.ge.s32.totalorder %s540_s20, 2  ;;  %s299_s21 = scalar_lea.sflag [#allocation5], %s298_s16 }
 0x11b   : > { %p403_p4 = pnand %p762_p2, %p761_p10 }
 0x11d   : > { %523 = dma.done.wait (!%p403_p4), %s299_s21, 128  }
 0x11e   : > { %525 = vsyncadd (!%p403_p4), %s299_s21, 4294967168  ;;  %p19_p5 = scmp.ge.s32.totalorder %s597_s22, 4   ;;  %s763_s17 = smov %s532_s18 }
 0x11f   : > { %s764_s18 = smov %s536_s19  ;;  %s765_s19 = smov %s609_s25 }
 0x120   : > { %s766_s20 = smov %s597_s22  ;;  %21 = sbr.rel (!%p19_p5) target bundleno = 7 (0x7), region = 89 }
 0x127   :  { %311 = vsyncpa [#allocation4], 1 }
 0x128   :  { %313 = vsyncpa [#allocation4 + $0x1], 1 }
 0x129   :  { %314 = vsyncpa [#allocation5], 1 }
 0x12a   :  { %316 = vsyncpa [#allocation5 + $0x1], 1 }

</bundles_post_ra>
